<compile_context>
chip_gen: v5e
topology: v5e:2x2
jax: 0.10.0
libtpu: 0.0.40
codegen_flags: <defaults>
</compile_context>

<pallas_src>
import math

import jax
import jax.numpy as jnp
from jax.experimental import pallas as pl
from jax.experimental.pallas import tpu as pltpu

D_MODEL = 64
MAX_LEN = 20

_SMALL_LIMIT_BYTES = 2 * 1024 * 1024   # whole-block (no-grid) path cap; well under
                                       # every generation's scoped VMEM default
                                       # (16 / 32 / 32 MiB on v5e / v6e / v7x)
_TARGET_TILE_BYTES = 1 << 20           # ~1 MiB x-tile for the tiled path


def make_positional_encoding(d_model: int = D_MODEL, max_len: int = MAX_LEN) -> jnp.ndarray:
    """Deterministic PE buffer, shape (max_len, d_model), float32.

    Matches:
      pe[:, 0::2] = sin(position * div_term)
      pe[:, 1::2] = cos(position * div_term)
    """
    assert d_model % 2 == 0, "interleaved sin/cos construction requires even d_model"
    position = jnp.arange(max_len, dtype=jnp.float32)[:, None]            # (L, 1)
    div_term = jnp.exp(
        jnp.arange(0, d_model, 2, dtype=jnp.float32) * -(math.log(10000.0) / d_model)
    )                                                                      # (D/2,)
    ang = position * div_term                                              # (L, D/2)
    pe = jnp.zeros((max_len, d_model), dtype=jnp.float32)
    pe = pe.at[:, 0::2].set(jnp.sin(ang))
    pe = pe.at[:, 1::2].set(jnp.cos(ang))
    return pe


def _add_pe_kernel(x_ref, pe_ref, o_ref):
    # Elementwise broadcast add.  pe_ref has either the same rows as x_ref
    # (whole-block path, pre-broadcast) or 1 row (tiled path, broadcasts here).
    # Add in f32, cast back to the output dtype on store (bf16-friendly).
    o_ref[...] = (x_ref[...].astype(jnp.float32) + pe_ref[...]).astype(o_ref.dtype)


def _round_up(n: int, m: int) -> int:
    return ((n + m - 1) // m) * m


def positional_encoding_forward(x: jnp.ndarray, pe_full: jnp.ndarray) -> jnp.ndarray:
    """x: (B, S, D); pe_full: (max_len, D) float32.  Returns x + pe[:S]."""
    B, S, D = x.shape
    itemsize = jnp.dtype(x.dtype).itemsize
    pe = pe_full[:S, :].astype(jnp.float32)          # (S, D) == pe[:, :x.size(1)]

    # Lane-dense 2-D layout: collapse (S, D) into the lane axis, pad to 128.
    L = S * D
    L_pad = _round_up(L, 128)
    x2 = x.reshape(B, L)
    pe2 = pe.reshape(1, L)
    if L_pad != L:
        # TODO(synk): lane padding costs an extra HBM pass at large sizes;
        # fuse this add into the consumer if that regime ever matters.
        x2 = jnp.pad(x2, ((0, 0), (0, L_pad - L)))
        pe2 = jnp.pad(pe2, ((0, 0), (0, L_pad - L)))

    x_bytes = B * L_pad * itemsize
    cost = pl.CostEstimate(
        flops=B * L,
        transcendentals=0,
        bytes_accessed=2 * B * L * itemsize + S * D * 4,
    )

    if x_bytes <= _SMALL_LIMIT_BYTES:
        # Whole-problem single block, fully sublane/lane packed:
        # (B*L_pad//128, 128).  pe is pre-broadcast wrapper-side (cheap here).
        rows = (B * L_pad) // 128
        xf = x2.reshape(rows, 128)
        pef = jnp.broadcast_to(pe2, (B, L_pad)).reshape(rows, 128)
        vmem = pl.BlockSpec(memory_space=pltpu.MemorySpace.VMEM)
        out = pl.pallas_call(
            _add_pe_kernel,
            out_shape=jax.ShapeDtypeStruct((rows, 128), x.dtype),
            in_specs=[vmem, vmem],
            out_specs=vmem,
            input_output_aliases={0: 0},   # requires caller to donate x
            cost_estimate=cost,
        )(xf, pef)
        out2 = out.reshape(B, L_pad)
    else:
        # Tiled over batch rows; pe stays VMEM-resident (constant index_map);
        # BlockSpec double-buffers the x tiles for DMA/compute overlap.
        row_bytes = L_pad * itemsize
        tb = _TARGET_TILE_BYTES // row_bytes
        tb = max(8, min(1024, (tb // 8) * 8))        # multiple-of-8 rows
        tb = min(tb, _round_up(B, 8))
        out2 = pl.pallas_call(
            _add_pe_kernel,
            out_shape=jax.ShapeDtypeStruct((B, L_pad), x.dtype),
            grid=(pl.cdiv(B, tb),),
            in_specs=[
                pl.BlockSpec((tb, L_pad), lambda i: (i, 0)),
                pl.BlockSpec((1, L_pad), lambda i: (0, 0)),   # VMEM-resident pe
            ],
            out_specs=pl.BlockSpec((tb, L_pad), lambda i: (i, 0)),
            input_output_aliases={0: 0},
            cost_estimate=cost,
            compiler_params=pltpu.CompilerParams(
                dimension_semantics=("parallel",),            # v7x: both TCs
                vmem_limit_bytes=32 * 1024 * 1024,            # headroom, fits all gens
            ),
        )(x2, pe2)

    if L_pad != L:
        out2 = out2[:, :L]
    return out2.reshape(B, S, D)


if __name__ == "__main__":
    # Small shapes consistent with the module: batch=2, seq=8, d_model=64.
    B, S, D = 2, 8, D_MODEL

    key = jax.random.PRNGKey(0)
    x = jax.random.normal(key, (B, S, D), dtype=jnp.float32)

    pe_full = make_positional_encoding(D_MODEL, MAX_LEN)

    # Plain-JAX reference computed BEFORE the kernel call, since x is donated.
    ref = jax.block_until_ready(x + pe_full[:S, :][None, :, :])

    # Donate x so input_output_aliases={0: 0} is honoured (no defensive copy).
    fwd = jax.jit(positional_encoding_forward, donate_argnums=(0,))
    out = jax.block_until_ready(fwd(x, pe_full))

    assert out.shape == (B, S, D)
    assert jnp.allclose(out, ref, atol=1e-6, rtol=1e-6)

    print("KERNEL_OK")
</pallas_src>

<mosaic_0001>
module attributes {stable_mosaic.version = 11 : i64} {
  func.func @_add_pe_kernel(%arg0: memref<8x128xf32, #tpu.memory_space<vmem>>, %arg1: memref<8x128xf32, #tpu.memory_space<vmem>>, %arg2: memref<8x128xf32, #tpu.memory_space<vmem>>) attributes {dimension_semantics = [], scalar_prefetch = 0 : i64, scratch_operands = 0 : i64, tpu.core_type = #tpu.core_type<tc>} {
    %c0 = arith.constant 0 : index
    %c0_0 = arith.constant 0 : index
    %0 = vector.load %arg0[%c0, %c0_0] : memref<8x128xf32, #tpu.memory_space<vmem>>, vector<8x128xf32>
    %c0_1 = arith.constant 0 : index
    %c0_2 = arith.constant 0 : index
    %1 = vector.load %arg1[%c0_1, %c0_2] : memref<8x128xf32, #tpu.memory_space<vmem>>, vector<8x128xf32>
    %2 = arith.addf %0, %1 : vector<8x128xf32>
    %c0_3 = arith.constant 0 : index
    %c0_4 = arith.constant 0 : index
    %3 = vector.load %arg2[%c0_3, %c0_4] : memref<8x128xf32, #tpu.memory_space<vmem>>, vector<8x128xf32>
    tpu.vector_store %arg2[%c0_3, %c0_4], %2 {strides = array<i32>} : memref<8x128xf32, #tpu.memory_space<vmem>>, vector<8x128xf32>,
    return
  }
}

</mosaic_0001>

<bundles_post_ra>
// kernel: positional_encoding_forward.1
= control target key start
LH: loop header
LB: loop body
LE: loop exit
PB: predicated region body
PF: predicated region fallthrough
CT: control target
= control target key end

     0   :  { %s43_s0 = inlined_call_operand.vmem [shape: f32[8,128], index: 0, kind: input, shape index: {}, may-alias: {0,2}]   ;;  %s44_s1 = inlined_call_operand.vmem [shape: f32[8,128], index: 1, kind: input, shape index: {}]   ;;  %s45_s2 = inlined_call_operand.vmem [shape: f32[8,128], index: 2, kind: output, shape index: {}, may-alias: {0,2}]  }
   0x1   :  { %v11_v0 = vld [vmem:[%s43_s0] sm:$0xff] }
   0x2   :  { %v12_v1 = vld [vmem:[%s44_s1] sm:$0xff] }
   0x3   :  { %v13_v2 = vadd.f32 %v12_v1, %v11_v0 }
   0x5   :  { %14 = vst [vmem:[%s45_s2] sm:$0xff] %v13_v2 }

</bundles_post_ra>
